<compile_context>
chip_gen: v7x
topology: tpu7x:2x2x1
jax: 0.10.0
libtpu: 0.0.40
codegen_flags: <defaults>
</compile_context>

<pallas_src>
import math

import jax
import jax.numpy as jnp
from jax import lax
from jax.experimental import pallas as pl
from jax.experimental.pallas import tpu as pltpu

# ---- scaled-down GPTConfig --------------------------------------------------
B, S, H = 2, 8, 32            # batch, seq, hidden_size
NH, HD = 4, 8                 # num_attention_heads, hidden_size_per_attention_head
HALF = HD // 2
HQ = NH * HALF                # 16 : width of each Q_left / Q_right / K_left / K_right group
BS = B * S                    # 16 : flattened (batch, seq) rows
J = NH * BS                   # 64 : flattened (head, batch, key) score columns
INTER = 64                    # intermediate_size
MAX_POS = 16                  # max_position_embeddings
EPS = 1e-5                    # layernorm_epsilon
NORM = math.sqrt(HD)          # attention norm factor
MASK_VALUE = -1e30            # finite large-negative mask (flash-attention style)
LAYER_NUMBER = 1              # >= 1 -> input_layernorm is present

MATMUL_DTYPE = jnp.float32    # set to jnp.bfloat16 on v6e/v7x at real sizes
APPROX_RECIP = True           # pl.reciprocal approx=True (EUP); flip off if tolerances tighten

# lane offsets inside the packed weight slab (each group starts on a 128-lane tile)
W_QKV, W_DENSE, W_HG = 0, 128, 256
W_SLAB_LANES = 384
OUT_LANES = 128               # padded, lane-dense output slab width


# ---- in-kernel helpers -------------------------------------------------------
def _layernorm(v, g, b):
    mu = jnp.mean(v, axis=-1, keepdims=True)
    c = v - mu
    var = jnp.mean(c * c, axis=-1, keepdims=True)
    return c * lax.rsqrt(var + EPS) * g + b


def _erf_poly(x):
    # Abramowitz & Stegun 7.1.26 (|abs err| < 1.5e-7); only mul/add/div/exp/select.
    a1, a2, a3, a4, a5 = 0.254829592, -0.284496736, 1.421413741, -1.453152027, 1.061405429
    p = 0.3275911
    ax = jnp.where(x >= 0.0, x, -x)
    t = 1.0 / (1.0 + p * ax)
    poly = ((((a5 * t + a4) * t + a3) * t + a2) * t + a1) * t
    y = 1.0 - poly * jnp.exp(-ax * ax)
    return jnp.where(x >= 0.0, y, -y)


def _gelu_exact(x):
    # matches torch.nn.functional.gelu (erf-based), to ~1.5e-7
    return 0.5 * x * (1.0 + _erf_poly(x * (1.0 / math.sqrt(2.0))))


# ---- fused kernel: LN -> QKV -> RoPE -> causal attn (all heads) -> dense -> LN -> GeGLU MLP
def gpt_block_kernel(x_ref, w_ref, wo_ref, cA_ref, cB_ref, cC_ref, out_ref):
    f32 = jnp.float32
    dt = MATMUL_DTYPE
    x = x_ref[...]                                       # (BS, H)

    # ---- packed constants (static ref slices; no per-call construction) ------
    bqkv = cC_ref[0:1, 0:3 * H]                          # Q part pre-scaled by 1/NORM
    bhg = cC_ref[1:2, :]                                 # (1, 2*INTER)
    ln1_g = cC_ref[2:3, 0:H]; ln1_b = cC_ref[3:4, 0:H]
    ln2_g = cC_ref[4:5, 0:H]; ln2_b = cC_ref[5:6, 0:H]
    b_dense = cC_ref[6:7, 0:H]; b_out = cC_ref[7:8, 0:H]

    addmask = cA_ref[0:BS, :]                            # (BS, J) causal/batch + user mask
    qk_head_mask = cA_ref[BS:BS + H, :]                  # (H, J)
    block_ones = cA_ref[BS + H:BS + H + J, :]            # (J, J)

    cos_rep = cB_ref[0:BS, 0:HQ]                         # (BS, HQ)
    sin_rep = cB_ref[0:BS, HQ:H]                         # (BS, HQ)
    v_head_mask = cB_ref[BS:BS + J, :]                   # (J, H)

    # ---- input layernorm + fused QKV projection (Q pre-scaled by 1/NORM) -----
    attn_in = _layernorm(x, ln1_g, ln1_b)
    mixed = jnp.dot(attn_in.astype(dt), w_ref[:, W_QKV:W_QKV + 3 * H],
                    preferred_element_type=f32) + bqkv   # (BS, 3H)

    # whole-slab RoPE (offset 0); columns are [Q_L | Q_R | K_L | K_R | V]
    qL = mixed[:, 0 * HQ:1 * HQ]; qR = mixed[:, 1 * HQ:2 * HQ]
    kL = mixed[:, 2 * HQ:3 * HQ]; kR = mixed[:, 3 * HQ:4 * HQ]
    v = mixed[:, 4 * HQ:]                                # (BS, H), standard head-major
    q_rot = jnp.concatenate([cos_rep * qL - sin_rep * qR,
                             sin_rep * qL + cos_rep * qR], axis=-1)   # (BS, H) split layout
    k_rot = jnp.concatenate([cos_rep * kL - sin_rep * kR,
                             sin_rep * kL + cos_rep * kR], axis=-1)   # (BS, H) split layout

    # ---- all-heads / all-batches attention via block-diagonal masking --------
    k_bd_t = jnp.concatenate([k_rot.T] * NH, axis=1) * qk_head_mask   # (H, J)
    scores = jnp.dot(q_rot.astype(dt), k_bd_t.astype(dt),
                     preferred_element_type=f32) + addmask            # (BS, J)

    # softmax: shared row shift is valid per (head,batch) block; block sums via matmul
    m = jnp.max(scores, axis=-1, keepdims=True)
    e = jnp.exp(scores - m)
    denom = jnp.dot(e.astype(dt), block_ones.astype(dt),
                    preferred_element_type=f32)                       # (BS, J)
    probs = e * pl.reciprocal(denom + 1e-30, approx=APPROX_RECIP)

    v_bd = jnp.concatenate([v] * NH, axis=0) * v_head_mask            # (J, H)
    ctx = jnp.dot(probs.astype(dt), v_bd.astype(dt),
                  preferred_element_type=f32)                         # (BS, H)

    # output projection + residual 1
    attn_out = jnp.dot(ctx.astype(dt), w_ref[:, W_DENSE:W_DENSE + H],
                       preferred_element_type=f32) + b_dense
    ln_in = attn_out + x
    ln_out = _layernorm(ln_in, ln2_g, ln2_b)

    # fused GeGLU MLP: one (H, 2*INTER) = 128-lane matmul, then split
    hg = jnp.dot(ln_out.astype(dt), w_ref[:, W_HG:W_HG + 2 * INTER],
                 preferred_element_type=f32) + bhg                    # (BS, 2*INTER)
    hidden = _gelu_exact(hg[:, :INTER])
    gate = hg[:, INTER:]
    mlp = jnp.dot((hidden * gate).astype(dt), wo_ref[...],
                  preferred_element_type=f32) + b_out

    y = mlp + ln_in

    # single lane-dense output slab: [out | k_rot(split) | v | zero pad]
    out_ref[...] = jnp.concatenate(
        [y, k_rot, v, jnp.zeros((BS, H), f32)], axis=-1)              # (BS, 128)


# ---- one-time parameter / constant preparation (out of the hot path) ---------
def rotary_cache():
    inv_freqs = 0.0001 ** (jnp.arange(0, HD, 2, dtype=jnp.float32) / HD)
    positions = jnp.arange(MAX_POS, dtype=jnp.float32)
    angles = positions[:, None] * inv_freqs[None, :]
    return jnp.cos(angles)[:S], jnp.sin(angles)[:S]


def _structural_valid():
    # (BS, J) bool: same batch AND causal, for column j = head*BS + b_key*S + k
    r = jnp.arange(BS)[:, None]
    c = jnp.arange(J)[None, :]
    same_batch = (r // S) == ((c % BS) // S)
    causal = (c % S) <= (r % S)
    return jnp.logical_and(same_batch, causal)


def prepare_params(params):
    """One-time prep: permute/scale/transpose weights, pack constants into slabs."""
    scale = 1.0 / NORM
    w = params["wqkv"].reshape(NH, 3, HD, H)
    b = params["bqkv"].reshape(NH, 3, HD)
    # torch per-head layout [q|k|v] -> kernel layout [Q_L | Q_R | K_L | K_R | V],
    # with the 1/sqrt(HD) score scale folded into Q.
    wqkv_k = jnp.concatenate([
        w[:, 0, :HALF].reshape(HQ, H) * scale, w[:, 0, HALF:].reshape(HQ, H) * scale,
        w[:, 1, :HALF].reshape(HQ, H), w[:, 1, HALF:].reshape(HQ, H),
        w[:, 2].reshape(NH * HD, H)], axis=0).T                       # (H, 3H)
    bqkv_k = jnp.concatenate([
        b[:, 0, :HALF].reshape(HQ) * scale, b[:, 0, HALF:].reshape(HQ) * scale,
        b[:, 1, :HALF].reshape(HQ), b[:, 1, HALF:].reshape(HQ),
        b[:, 2].reshape(NH * HD)], axis=0)                            # (3H,)

    # lane-packed weight slab: [QKV @0 | dense @128 | hidden|gate @256]  (32, 384)
    w_slab = jnp.zeros((H, W_SLAB_LANES), jnp.float32)
    w_slab = w_slab.at[:, W_QKV:W_QKV + 3 * H].set(wqkv_k)
    w_slab = w_slab.at[:, W_DENSE:W_DENSE + H].set(params["wdense"].T)
    w_slab = w_slab.at[:, W_HG:W_HG + INTER].set(params["wh"].T)
    w_slab = w_slab.at[:, W_HG + INTER:W_HG + 2 * INTER].set(params["wg"].T)
    w_slab = w_slab.astype(MATMUL_DTYPE)
    wo_k = params["wo"].T.astype(MATMUL_DTYPE)                        # (INTER, H)

    # constant slab A (J lanes): additive mask / QK head mask / block-ones   (112, 64)
    addmask = jnp.where(_structural_valid(), 0.0, MASK_VALUE).astype(jnp.float32)
    d = jnp.arange(H)[:, None]
    qk_head_mask = (((d % HQ) // HALF) == (jnp.arange(J)[None, :] // BS)).astype(jnp.float32)
    bi = jnp.arange(J)[:, None]
    bj = jnp.arange(J)[None, :]
    block_ones = ((bi // S) == (bj // S)).astype(jnp.float32)
    cA = jnp.concatenate([addmask, qk_head_mask, block_ones], axis=0)

    # constant slab B (H lanes): RoPE trig (cos|sin, tiled) / V head mask     (80, 32)
    cos, sin = rotary_cache()                                         # (S, HALF) each
    trig = jnp.concatenate([jnp.tile(cos, (B, NH)), jnp.tile(sin, (B, NH))], axis=1)
    v_head_mask = ((jnp.arange(J)[:, None] // BS)
                   == (jnp.arange(H)[None, :] // HD)).astype(jnp.float32)
    cB = jnp.concatenate([trig, v_head_mask], axis=0)

    # constant slab C (128 lanes): biases & layernorm params                  (8, 128)
    def pad_row(vec):
        return jnp.zeros((1, OUT_LANES), jnp.float32).at[0, :vec.shape[0]].set(vec)
    cC = jnp.concatenate([
        pad_row(bqkv_k),
        pad_row(jnp.concatenate([params["bh"], params["bg"]])),
        pad_row(params["ln1_g"]), pad_row(params["ln1_b"]),
        pad_row(params["ln2_g"]), pad_row(params["ln2_b"]),
        pad_row(params["bdense"]), pad_row(params["bo"]),
    ], axis=0)

    return {"w_slab": w_slab, "wo": wo_k, "cA": cA, "cB": cB, "cC": cC}


# ---- forward wrapper ----------------------------------------------------------
@jax.jit
def gpt_block(prep, x, mask=None):
    cA = prep["cA"]
    if mask is not None:
        amask = 10000.0 * (mask.astype(jnp.float32) - 1.0)            # (B, S)
        amask_flat = jnp.tile(amask.reshape(1, BS), (1, NH))          # (1, J)
        cA = cA.at[0:BS, :].set(jnp.where(_structural_valid(), amask_flat, MASK_VALUE))
        # TODO(synk): rotary position offset for left-padded masks and layer_past (KV cache)
        # are not implemented in the kernel path.

    args = (x.reshape(BS, H), prep["w_slab"], prep["wo"], cA, prep["cB"], prep["cC"])

    # Grid-less call: whole-array VMEM residency, no degenerate 1-step pipeline.
    # (v7x at real sizes: add a leading "parallel" grid axis over the BS rows for the
    #  two TensorCores and K/N-tile w_slab/wo to respect the 64 MiB VMEM.)
    vmem_spec = pl.BlockSpec(memory_space=pltpu.MemorySpace.VMEM)
    out_slab = pl.pallas_call(
        gpt_block_kernel,
        out_shape=jax.ShapeDtypeStruct((BS, OUT_LANES), jnp.float32),
        in_specs=[vmem_spec] * len(args),
        out_specs=vmem_spec,
    )(*args)

    # wrapper-side (free XLA) layout plumbing back to the PyTorch-module layouts
    out = out_slab[:, :H].reshape(B, S, H)
    k_split = out_slab[:, H:2 * H]
    v_flat = out_slab[:, 2 * H:3 * H]
    k_present = jnp.concatenate(
        [k_split[:, :HQ].reshape(B, S, NH, HALF),
         k_split[:, HQ:].reshape(B, S, NH, HALF)], axis=-1).transpose(0, 2, 1, 3)
    v_present = v_flat.reshape(B, S, NH, HD).transpose(0, 2, 1, 3)
    return out, (k_present, v_present)


# ---- deterministic parameter init (torch nn.Linear / nn.LayerNorm shapes) -----
def init_params(key):
    ks = jax.random.split(key, 5)

    def lin(k, n_out, n_in):
        kw, kb = jax.random.split(k)
        bound = 1.0 / math.sqrt(n_in)
        w = jax.random.uniform(kw, (n_out, n_in), jnp.float32, -bound, bound)
        b = jax.random.uniform(kb, (n_out,), jnp.float32, -bound, bound)
        return w, b

    p = {}
    p["ln1_g"] = jnp.ones((H,), jnp.float32)
    p["ln1_b"] = jnp.zeros((H,), jnp.float32)
    p["wqkv"], p["bqkv"] = lin(ks[0], 3 * H, H)        # query_key_value
    p["wdense"], p["bdense"] = lin(ks[1], H, H)        # attention.dense
    p["ln2_g"] = jnp.ones((H,), jnp.float32)
    p["ln2_b"] = jnp.zeros((H,), jnp.float32)
    p["wh"], p["bh"] = lin(ks[2], INTER, H)            # dense_ffn_hidden
    p["wg"], p["bg"] = lin(ks[3], INTER, H)            # dense_ffn_gate
    p["wo"], p["bo"] = lin(ks[4], H, INTER)            # dense_ffn_output
    return p


# ---- pure-JAX reference (mirrors the PyTorch forward) --------------------------
def ref_forward(params, x):
    cos, sin = rotary_cache()

    def ln(v, g, b):
        mu = v.mean(-1, keepdims=True)
        var = ((v - mu) ** 2).mean(-1, keepdims=True)
        return (v - mu) / jnp.sqrt(var + EPS) * g + b

    attn_in = ln(x, params["ln1_g"], params["ln1_b"])
    mixed = attn_in @ params["wqkv"].T + params["bqkv"]
    mixed = mixed.reshape(B, S, NH, 3 * HD)
    q, k, v = mixed[..., :HD], mixed[..., HD:2 * HD], mixed[..., 2 * HD:]
    c = cos[None, :, None, :]
    s = sin[None, :, None, :]

    def rope(t):
        l, r = t[..., :HALF], t[..., HALF:]
        return jnp.concatenate([c * l - s * r, s * l + c * r], axis=-1)

    q, k = rope(q), rope(k)
    scores = jnp.einsum("bqhd,bkhd->bhqk", q, k) / NORM
    causal = jnp.arange(S)[None, :] <= jnp.arange(S)[:, None]
    scores = jnp.where(causal[None, None], scores, MASK_VALUE)
    probs = jax.nn.softmax(scores, axis=-1)
    ctx = jnp.einsum("bhqk,bkhd->bqhd", probs, v).reshape(B, S, H)
    attn_out = ctx @ params["wdense"].T + params["bdense"]
    ln_in = attn_out + x
    ln_out = ln(ln_in, params["ln2_g"], params["ln2_b"])
    hidden = jax.nn.gelu(ln_out @ params["wh"].T + params["bh"], approximate=False)
    gate = ln_out @ params["wg"].T + params["bg"]
    mlp = (hidden * gate) @ params["wo"].T + params["bo"]
    out = mlp + ln_in
    k_pres = jnp.transpose(k, (0, 2, 1, 3))
    v_pres = jnp.transpose(v, (0, 2, 1, 3))
    return out, k_pres, v_pres


if __name__ == "__main__":
    key = jax.random.PRNGKey(0)
    pkey, xkey = jax.random.split(key)
    params = init_params(pkey)
    prep = prepare_params(params)          # one-time prep, outside the hot path
    x = jax.random.normal(xkey, (B, S, H), jnp.float32)

    out, (k_present, v_present) = gpt_block(prep, x, mask=None)
    jax.block_until_ready((out, k_present, v_present))

    ref_out, ref_k, ref_v = ref_forward(params, x)
    assert out.shape == (B, S, H)
    assert k_present.shape == (B, NH, S, HD) and v_present.shape == (B, NH, S, HD)
    assert jnp.allclose(out, ref_out, atol=2e-3, rtol=2e-3)
    assert jnp.allclose(k_present, ref_k, atol=2e-3, rtol=2e-3)
    assert jnp.allclose(v_present, ref_v, atol=2e-3, rtol=2e-3)
    print("KERNEL_OK")
</pallas_src>

<mosaic_0001>
module attributes {stable_mosaic.version = 11 : i64} {
  func.func @gpt_block_kernel(%arg0: memref<16x32xf32, #tpu.memory_space<vmem>>, %arg1: memref<32x384xf32, #tpu.memory_space<vmem>>, %arg2: memref<64x32xf32, #tpu.memory_space<vmem>>, %arg3: memref<112x64xf32, #tpu.memory_space<vmem>>, %arg4: memref<80x32xf32, #tpu.memory_space<vmem>>, %arg5: memref<8x128xf32, #tpu.memory_space<vmem>>, %arg6: memref<16x128xf32, #tpu.memory_space<vmem>>) attributes {dimension_semantics = [], scalar_prefetch = 0 : i64, scratch_operands = 0 : i64, tpu.core_type = #tpu.core_type<tc>} {
    %c0 = arith.constant 0 : index
    %c0_0 = arith.constant 0 : index
    %0 = vector.load %arg0[%c0, %c0_0] : memref<16x32xf32, #tpu.memory_space<vmem>>, vector<16x32xf32>
    %c0_1 = arith.constant 0 : index
    %c0_2 = arith.constant 0 : index
    %1 = vector.load %arg5[%c0_1, %c0_2] : memref<8x128xf32, #tpu.memory_space<vmem>>, vector<1x96xf32>
    %c1 = arith.constant 1 : index
    %c0_3 = arith.constant 0 : index
    %2 = vector.load %arg5[%c1, %c0_3] : memref<8x128xf32, #tpu.memory_space<vmem>>, vector<1x128xf32>
    %c2 = arith.constant 2 : index
    %c0_4 = arith.constant 0 : index
    %3 = vector.load %arg5[%c2, %c0_4] : memref<8x128xf32, #tpu.memory_space<vmem>>, vector<1x32xf32>
    %c3 = arith.constant 3 : index
    %c0_5 = arith.constant 0 : index
    %4 = vector.load %arg5[%c3, %c0_5] : memref<8x128xf32, #tpu.memory_space<vmem>>, vector<1x32xf32>
    %c4 = arith.constant 4 : index
    %c0_6 = arith.constant 0 : index
    %5 = vector.load %arg5[%c4, %c0_6] : memref<8x128xf32, #tpu.memory_space<vmem>>, vector<1x32xf32>
    %c5 = arith.constant 5 : index
    %c0_7 = arith.constant 0 : index
    %6 = vector.load %arg5[%c5, %c0_7] : memref<8x128xf32, #tpu.memory_space<vmem>>, vector<1x32xf32>
    %c6 = arith.constant 6 : index
    %c0_8 = arith.constant 0 : index
    %7 = vector.load %arg5[%c6, %c0_8] : memref<8x128xf32, #tpu.memory_space<vmem>>, vector<1x32xf32>
    %c7 = arith.constant 7 : index
    %c0_9 = arith.constant 0 : index
    %8 = vector.load %arg5[%c7, %c0_9] : memref<8x128xf32, #tpu.memory_space<vmem>>, vector<1x32xf32>
    %c0_10 = arith.constant 0 : index
    %c0_11 = arith.constant 0 : index
    %9 = vector.load %arg3[%c0_10, %c0_11] : memref<112x64xf32, #tpu.memory_space<vmem>>, vector<16x64xf32>
    %c16 = arith.constant 16 : index
    %c0_12 = arith.constant 0 : index
    %10 = vector.load %arg3[%c16, %c0_12] : memref<112x64xf32, #tpu.memory_space<vmem>>, vector<32x64xf32>
    %c48 = arith.constant 48 : index
    %c0_13 = arith.constant 0 : index
    %11 = vector.load %arg3[%c48, %c0_13] : memref<112x64xf32, #tpu.memory_space<vmem>>, vector<64x64xf32>
    %c0_14 = arith.constant 0 : index
    %c0_15 = arith.constant 0 : index
    %12 = vector.load %arg4[%c0_14, %c0_15] : memref<80x32xf32, #tpu.memory_space<vmem>>, vector<16x16xf32>
    %c0_16 = arith.constant 0 : index
    %c16_17 = arith.constant 16 : index
    %13 = vector.load %arg4[%c0_16, %c16_17] : memref<80x32xf32, #tpu.memory_space<vmem>>, vector<16x16xf32>
    %c16_18 = arith.constant 16 : index
    %c0_19 = arith.constant 0 : index
    %14 = vector.load %arg4[%c16_18, %c0_19] : memref<80x32xf32, #tpu.memory_space<vmem>>, vector<64x32xf32>
    %cst = arith.constant dense<0.000000e+00> : vector<16xf32>
    %15 = vector.multi_reduction <add>, %0, %cst [1] : vector<16x32xf32> to vector<16xf32>
    %16 = vector.shape_cast %15 : vector<16xf32> to vector<16x1xf32>
    %cst_20 = arith.constant 3.200000e+01 : f32
    %17 = vector.broadcast %cst_20 : f32 to vector<16x1xf32>
    %18 = arith.divf %16, %17 : vector<16x1xf32>
    %19 = vector.broadcast %18 : vector<16x1xf32> to vector<16x32xf32>
    %20 = arith.subf %0, %19 : vector<16x32xf32>
    %21 = arith.mulf %20, %20 : vector<16x32xf32>
    %cst_21 = arith.constant dense<0.000000e+00> : vector<16xf32>
    %22 = vector.multi_reduction <add>, %21, %cst_21 [1] : vector<16x32xf32> to vector<16xf32>
    %23 = vector.shape_cast %22 : vector<16xf32> to vector<16x1xf32>
    %cst_22 = arith.constant 3.200000e+01 : f32
    %24 = vector.broadcast %cst_22 : f32 to vector<16x1xf32>
    %25 = arith.divf %23, %24 : vector<16x1xf32>
    %cst_23 = arith.constant 9.99999974E-6 : f32
    %26 = vector.broadcast %cst_23 : f32 to vector<16x1xf32>
    %27 = arith.addf %25, %26 : vector<16x1xf32>
    %28 = math.rsqrt %27 : vector<16x1xf32>
    %29 = vector.broadcast %28 : vector<16x1xf32> to vector<16x32xf32>
    %30 = arith.mulf %20, %29 : vector<16x32xf32>
    %31 = vector.broadcast %3 : vector<1x32xf32> to vector<16x32xf32>
    %32 = arith.mulf %30, %31 : vector<16x32xf32>
    %33 = vector.broadcast %4 : vector<1x32xf32> to vector<16x32xf32>
    %34 = arith.addf %32, %33 : vector<16x32xf32>
    %c0_24 = arith.constant 0 : index
    %c0_25 = arith.constant 0 : index
    %35 = vector.load %arg1[%c0_24, %c0_25] : memref<32x384xf32, #tpu.memory_space<vmem>>, vector<32x96xf32>
    %cst_26 = arith.constant dense<0.000000e+00> : vector<16x96xf32>
    %36 = tpu.matmul %34, %35, %cst_26 {dimension_numbers = #tpu.dot_dimension_numbers<[1], [0], [0], [1], [0, 0, 1, 1], [], []>} : vector<16x32xf32>, vector<32x96xf32>, vector<16x96xf32> -> vector<16x96xf32>
    %37 = vector.broadcast %1 : vector<1x96xf32> to vector<16x96xf32>
    %38 = arith.addf %36, %37 : vector<16x96xf32>
    %39 = vector.extract_strided_slice %38 {offsets = [0, 0], sizes = [16, 16], strides = [1, 1]} : vector<16x96xf32> to vector<16x16xf32>
    %40 = vector.extract_strided_slice %38 {offsets = [0, 16], sizes = [16, 16], strides = [1, 1]} : vector<16x96xf32> to vector<16x16xf32>
    %41 = vector.extract_strided_slice %38 {offsets = [0, 32], sizes = [16, 16], strides = [1, 1]} : vector<16x96xf32> to vector<16x16xf32>
    %42 = vector.extract_strided_slice %38 {offsets = [0, 48], sizes = [16, 16], strides = [1, 1]} : vector<16x96xf32> to vector<16x16xf32>
    %43 = vector.extract_strided_slice %38 {offsets = [0, 64], sizes = [16, 32], strides = [1, 1]} : vector<16x96xf32> to vector<16x32xf32>
    %44 = arith.mulf %12, %39 : vector<16x16xf32>
    %45 = arith.mulf %13, %40 : vector<16x16xf32>
    %46 = arith.subf %44, %45 : vector<16x16xf32>
    %47 = arith.mulf %13, %39 : vector<16x16xf32>
    %48 = arith.mulf %12, %40 : vector<16x16xf32>
    %49 = arith.addf %47, %48 : vector<16x16xf32>
    %50 = tpu.concatenate %46, %49 in 1 : vector<16x16xf32>, vector<16x16xf32> -> vector<16x32xf32>
    %51 = arith.mulf %12, %41 : vector<16x16xf32>
    %52 = arith.mulf %13, %42 : vector<16x16xf32>
    %53 = arith.subf %51, %52 : vector<16x16xf32>
    %54 = arith.mulf %13, %41 : vector<16x16xf32>
    %55 = arith.mulf %12, %42 : vector<16x16xf32>
    %56 = arith.addf %54, %55 : vector<16x16xf32>
    %57 = tpu.concatenate %53, %56 in 1 : vector<16x16xf32>, vector<16x16xf32> -> vector<16x32xf32>
    %58 = tpu.transpose %57, [1, 0] : vector<16x32xf32> -> vector<32x16xf32>
    %59 = tpu.concatenate %58, %58, %58, %58 in 1 : vector<32x16xf32>, vector<32x16xf32>, vector<32x16xf32>, vector<32x16xf32> -> vector<32x64xf32>
    %60 = arith.mulf %59, %10 : vector<32x64xf32>
    %cst_27 = arith.constant dense<0.000000e+00> : vector<16x64xf32>
    %61 = tpu.matmul %50, %60, %cst_27 {dimension_numbers = #tpu.dot_dimension_numbers<[1], [0], [0], [1], [0, 0, 1, 1], [], []>} : vector<16x32xf32>, vector<32x64xf32>, vector<16x64xf32> -> vector<16x64xf32>
    %62 = arith.addf %61, %9 : vector<16x64xf32>
    %cst_28 = arith.constant dense<0xFF800000> : vector<16xf32>
    %63 = vector.multi_reduction <maximumf>, %62, %cst_28 [1] : vector<16x64xf32> to vector<16xf32>
    %64 = vector.shape_cast %63 : vector<16xf32> to vector<16x1xf32>
    %65 = vector.broadcast %64 : vector<16x1xf32> to vector<16x64xf32>
    %66 = arith.subf %62, %65 : vector<16x64xf32>
    %67 = math.exp %66 : vector<16x64xf32>
    %cst_29 = arith.constant dense<0.000000e+00> : vector<16x64xf32>
    %68 = tpu.matmul %67, %11, %cst_29 {dimension_numbers = #tpu.dot_dimension_numbers<[1], [0], [0], [1], [0, 0, 1, 1], [], []>} : vector<16x64xf32>, vector<64x64xf32>, vector<16x64xf32> -> vector<16x64xf32>
    %cst_30 = arith.constant 1.000000e-30 : f32
    %69 = vector.broadcast %cst_30 : f32 to vector<16x64xf32>
    %70 = arith.addf %68, %69 : vector<16x64xf32>
    %71 = tpu.reciprocal %70 {approx = true} : vector<16x64xf32> -> vector<16x64xf32>
    %72 = arith.mulf %67, %71 : vector<16x64xf32>
    %73 = tpu.concatenate %43, %43, %43, %43 in 0 : vector<16x32xf32>, vector<16x32xf32>, vector<16x32xf32>, vector<16x32xf32> -> vector<64x32xf32>
    %74 = arith.mulf %73, %14 : vector<64x32xf32>
    %cst_31 = arith.constant dense<0.000000e+00> : vector<16x32xf32>
    %75 = tpu.matmul %72, %74, %cst_31 {dimension_numbers = #tpu.dot_dimension_numbers<[1], [0], [0], [1], [0, 0, 1, 1], [], []>} : vector<16x64xf32>, vector<64x32xf32>, vector<16x32xf32> -> vector<16x32xf32>
    %c0_32 = arith.constant 0 : index
    %c128 = arith.constant 128 : index
    %76 = vector.load %arg1[%c0_32, %c128] : memref<32x384xf32, #tpu.memory_space<vmem>>, vector<32x32xf32>
    %cst_33 = arith.constant dense<0.000000e+00> : vector<16x32xf32>
    %77 = tpu.matmul %75, %76, %cst_33 {dimension_numbers = #tpu.dot_dimension_numbers<[1], [0], [0], [1], [0, 0, 1, 1], [], []>} : vector<16x32xf32>, vector<32x32xf32>, vector<16x32xf32> -> vector<16x32xf32>
    %78 = vector.broadcast %7 : vector<1x32xf32> to vector<16x32xf32>
    %79 = arith.addf %77, %78 : vector<16x32xf32>
    %80 = arith.addf %79, %0 : vector<16x32xf32>
    %cst_34 = arith.constant dense<0.000000e+00> : vector<16xf32>
    %81 = vector.multi_reduction <add>, %80, %cst_34 [1] : vector<16x32xf32> to vector<16xf32>
    %82 = vector.shape_cast %81 : vector<16xf32> to vector<16x1xf32>
    %cst_35 = arith.constant 3.200000e+01 : f32
    %83 = vector.broadcast %cst_35 : f32 to vector<16x1xf32>
    %84 = arith.divf %82, %83 : vector<16x1xf32>
    %85 = vector.broadcast %84 : vector<16x1xf32> to vector<16x32xf32>
    %86 = arith.subf %80, %85 : vector<16x32xf32>
    %87 = arith.mulf %86, %86 : vector<16x32xf32>
    %cst_36 = arith.constant dense<0.000000e+00> : vector<16xf32>
    %88 = vector.multi_reduction <add>, %87, %cst_36 [1] : vector<16x32xf32> to vector<16xf32>
    %89 = vector.shape_cast %88 : vector<16xf32> to vector<16x1xf32>
    %cst_37 = arith.constant 3.200000e+01 : f32
    %90 = vector.broadcast %cst_37 : f32 to vector<16x1xf32>
    %91 = arith.divf %89, %90 : vector<16x1xf32>
    %cst_38 = arith.constant 9.99999974E-6 : f32
    %92 = vector.broadcast %cst_38 : f32 to vector<16x1xf32>
    %93 = arith.addf %91, %92 : vector<16x1xf32>
    %94 = math.rsqrt %93 : vector<16x1xf32>
    %95 = vector.broadcast %94 : vector<16x1xf32> to vector<16x32xf32>
    %96 = arith.mulf %86, %95 : vector<16x32xf32>
    %97 = vector.broadcast %5 : vector<1x32xf32> to vector<16x32xf32>
    %98 = arith.mulf %96, %97 : vector<16x32xf32>
    %99 = vector.broadcast %6 : vector<1x32xf32> to vector<16x32xf32>
    %100 = arith.addf %98, %99 : vector<16x32xf32>
    %c0_39 = arith.constant 0 : index
    %c256 = arith.constant 256 : index
    %101 = vector.load %arg1[%c0_39, %c256] : memref<32x384xf32, #tpu.memory_space<vmem>>, vector<32x128xf32>
    %cst_40 = arith.constant dense<0.000000e+00> : vector<16x128xf32>
    %102 = tpu.matmul %100, %101, %cst_40 {dimension_numbers = #tpu.dot_dimension_numbers<[1], [0], [0], [1], [0, 0, 1, 1], [], []>} : vector<16x32xf32>, vector<32x128xf32>, vector<16x128xf32> -> vector<16x128xf32>
    %103 = vector.broadcast %2 : vector<1x128xf32> to vector<16x128xf32>
    %104 = arith.addf %102, %103 : vector<16x128xf32>
    %105 = vector.extract_strided_slice %104 {offsets = [0, 0], sizes = [16, 64], strides = [1, 1]} : vector<16x128xf32> to vector<16x64xf32>
    %cst_41 = arith.constant 5.000000e-01 : f32
    %106 = vector.broadcast %cst_41 : f32 to vector<16x64xf32>
    %107 = arith.mulf %106, %105 : vector<16x64xf32>
    %cst_42 = arith.constant 0.707106769 : f32
    %108 = vector.broadcast %cst_42 : f32 to vector<16x64xf32>
    %109 = arith.mulf %105, %108 : vector<16x64xf32>
    %cst_43 = arith.constant 0.000000e+00 : f32
    %110 = vector.broadcast %cst_43 : f32 to vector<16x64xf32>
    %111 = arith.cmpf oge, %109, %110 : vector<16x64xf32>
    %cst_44 = arith.constant 0.000000e+00 : f32
    %112 = vector.broadcast %cst_44 : f32 to vector<16x64xf32>
    %113 = arith.subf %112, %109 : vector<16x64xf32>
    %114 = arith.select %111, %109, %113 : vector<16x64xi1>, vector<16x64xf32>
    %cst_45 = arith.constant 0.327591091 : f32
    %115 = vector.broadcast %cst_45 : f32 to vector<16x64xf32>
    %116 = arith.mulf %115, %114 : vector<16x64xf32>
    %cst_46 = arith.constant 1.000000e+00 : f32
    %117 = vector.broadcast %cst_46 : f32 to vector<16x64xf32>
    %118 = arith.addf %117, %116 : vector<16x64xf32>
    %cst_47 = arith.constant 1.000000e+00 : f32
    %119 = vector.broadcast %cst_47 : f32 to vector<16x64xf32>
    %120 = arith.divf %119, %118 : vector<16x64xf32>
    %cst_48 = arith.constant 1.06140542 : f32
    %121 = vector.broadcast %cst_48 : f32 to vector<16x64xf32>
    %122 = arith.mulf %121, %120 : vector<16x64xf32>
    %cst_49 = arith.constant -1.45315206 : f32
    %123 = vector.broadcast %cst_49 : f32 to vector<16x64xf32>
    %124 = arith.addf %122, %123 : vector<16x64xf32>
    %125 = arith.mulf %124, %120 : vector<16x64xf32>
    %cst_50 = arith.constant 1.42141378 : f32
    %126 = vector.broadcast %cst_50 : f32 to vector<16x64xf32>
    %127 = arith.addf %125, %126 : vector<16x64xf32>
    %128 = arith.mulf %127, %120 : vector<16x64xf32>
    %cst_51 = arith.constant -0.284496725 : f32
    %129 = vector.broadcast %cst_51 : f32 to vector<16x64xf32>
    %130 = arith.addf %128, %129 : vector<16x64xf32>
    %131 = arith.mulf %130, %120 : vector<16x64xf32>
    %cst_52 = arith.constant 0.254829586 : f32
    %132 = vector.broadcast %cst_52 : f32 to vector<16x64xf32>
    %133 = arith.addf %131, %132 : vector<16x64xf32>
    %134 = arith.mulf %133, %120 : vector<16x64xf32>
    %cst_53 = arith.constant 0.000000e+00 : f32
    %135 = vector.broadcast %cst_53 : f32 to vector<16x64xf32>
    %136 = arith.subf %135, %114 : vector<16x64xf32>
    %137 = arith.mulf %136, %114 : vector<16x64xf32>
    %138 = math.exp %137 : vector<16x64xf32>
    %139 = arith.mulf %134, %138 : vector<16x64xf32>
    %cst_54 = arith.constant 1.000000e+00 : f32
    %140 = vector.broadcast %cst_54 : f32 to vector<16x64xf32>
    %141 = arith.subf %140, %139 : vector<16x64xf32>
    %cst_55 = arith.constant 0.000000e+00 : f32
    %142 = vector.broadcast %cst_55 : f32 to vector<16x64xf32>
    %143 = arith.cmpf oge, %109, %142 : vector<16x64xf32>
    %cst_56 = arith.constant 0.000000e+00 : f32
    %144 = vector.broadcast %cst_56 : f32 to vector<16x64xf32>
    %145 = arith.subf %144, %141 : vector<16x64xf32>
    %146 = arith.select %143, %141, %145 : vector<16x64xi1>, vector<16x64xf32>
    %cst_57 = arith.constant 1.000000e+00 : f32
    %147 = vector.broadcast %cst_57 : f32 to vector<16x64xf32>
    %148 = arith.addf %147, %146 : vector<16x64xf32>
    %149 = arith.mulf %107, %148 : vector<16x64xf32>
    %150 = vector.extract_strided_slice %104 {offsets = [0, 64], sizes = [16, 64], strides = [1, 1]} : vector<16x128xf32> to vector<16x64xf32>
    %151 = arith.mulf %149, %150 : vector<16x64xf32>
    %c0_58 = arith.constant 0 : index
    %c0_59 = arith.constant 0 : index
    %152 = vector.load %arg2[%c0_58, %c0_59] : memref<64x32xf32, #tpu.memory_space<vmem>>, vector<64x32xf32>
    %cst_60 = arith.constant dense<0.000000e+00> : vector<16x32xf32>
    %153 = tpu.matmul %151, %152, %cst_60 {dimension_numbers = #tpu.dot_dimension_numbers<[1], [0], [0], [1], [0, 0, 1, 1], [], []>} : vector<16x64xf32>, vector<64x32xf32>, vector<16x32xf32> -> vector<16x32xf32>
    %154 = vector.broadcast %8 : vector<1x32xf32> to vector<16x32xf32>
    %155 = arith.addf %153, %154 : vector<16x32xf32>
    %156 = arith.addf %155, %80 : vector<16x32xf32>
    %cst_61 = arith.constant 0.000000e+00 : f32
    %157 = vector.broadcast %cst_61 : f32 to vector<16x32xf32>
    %158 = tpu.concatenate %156, %57, %43, %157 in 1 : vector<16x32xf32>, vector<16x32xf32>, vector<16x32xf32>, vector<16x32xf32> -> vector<16x128xf32>
    %c0_62 = arith.constant 0 : index
    %c0_63 = arith.constant 0 : index
    %159 = vector.load %arg6[%c0_62, %c0_63] : memref<16x128xf32, #tpu.memory_space<vmem>>, vector<16x128xf32>
    tpu.vector_store %arg6[%c0_62, %c0_63], %158 {strides = array<i32>} : memref<16x128xf32, #tpu.memory_space<vmem>>, vector<16x128xf32>,
    return
  }
}

</mosaic_0001>

<bundles_post_ra>
// kernel: gpt_block.1
= control target key start
LH: loop header
LB: loop body
LE: loop exit
PB: predicated region body
PF: predicated region fallthrough
CT: control target
= control target key end

     0   :  { %vm57_vm0 = vcmask 261120   ;;  %s1397_s14 = smov 96   ;;  %s1398_s15 = smov 80   ;;  %vm226_vm1 = vcmask 130048   ;;  %vm347_vm2 = vcmask 392192   ;;  %vm437_vm3 = vcmask 523264   ;;  %s1757_s0 = inlined_call_operand.vmem [shape: f32[16,32], index: 0, kind: input, shape index: {}]   ;;  %s1758_s1 = inlined_call_operand.vmem [shape: f32[32,384], index: 1, kind: input, shape index: {}]   ;;  %s1759_s5 = inlined_call_operand.vmem [shape: f32[8,128], index: 5, kind: input, shape index: {}]   ;;  %s1760_s4 = inlined_call_operand.vmem [shape: f32[80,32], index: 4, kind: input, shape index: {}]   ;;  %s1761_s3 = inlined_call_operand.vmem [shape: f32[112,64], index: 3, kind: input, shape index: {}]   ;;  %s1762_s2 = inlined_call_operand.vmem [shape: f32[64,32], index: 2, kind: input, shape index: {}]   ;;  %s1763_s6 = inlined_call_operand.vmem [shape: f32[16,128], index: 6, kind: output, shape index: {}]  }
   0x1   :  { %v1442_v0 = vld [vmem:[%s1757_s0] sm:$0xff]  ;;  %v1447_v1 = vld [vmem:[%s1757_s0 + $0x8] sm:$0xff]  ;;  %v98_v15 = vld [vmem:[%s1758_s1 + $0x18] sm:$0xff]  ;;  %s1399_s16 = smov 112   ;;  %s1400_s21 = smov 16   ;;  %vm1079_vm6 = vcmask 785408  }
   0x2   :  { %v58_v2 = vsel %vm57_vm0, %v1442_v0, 0.0  ;;  %v61_v3 = vsel %vm57_vm0, %v1447_v1, 0.0  ;;  %v97_v14 = vld [vmem:[%s1758_s1] sm:$0xff]  ;;  %v99_v16 = vld [vmem:[%s1758_s1 + $0x30] sm:$0xff]  ;;  %v100_v18 = vld [vmem:[%s1758_s1 + $0x48] sm:$0xff]  ;;  %s1401_s22 = smov 32  }
   0x3   :  { %59 = vadd.xlane.f32.xlu0 %v58_v2  ;;  %v1265_v17 = vpack.c.bf16 %v98_v15, %v97_v14  ;;  %v1269_v19 = vpack.c.bf16 %v100_v18, %v99_v16  ;;  %v1088_v27 = vld [vmem:[%s1759_s5 + $0x2] ss:$0 sm:$0xff]  ;;  %v1089_v29 = vld [vmem:[%s1759_s5 + $0x3] ss:$0 sm:$0xff]  ;;  %v1090_v36 = vld [vmem:[%s1759_s5] ss:$0 sm:$0xff] }
   0x4   :  { %v1495_v42 = vld [vmem:[%s1760_s4] sm:$0xff]  ;;  %v1502_v46 = vld [vmem:[%s1760_s4 + $0x8] sm:$0xff]  ;;  %s1402_s23 = smov 48   ;;  %v35_v16 = vld [vmem:[%s1761_s3 + $0x10] sm:$0xff] }
   0x5   :  { %1266 = vmatprep.subr.bf16.mxu1 %v1265_v17 }
   0x6   :  { %1268 = vmatpush3.bf16.msra.mxu1 %v1265_v17 }
   0x7   :  { %62 = vadd.xlane.f32.xlu0 %v61_v3  ;;  %1270 = vmatprep.subr.bf16.mxu1 %v1269_v19 }
   0xa   :  { %1272 = vmatpush3.bf16.msra.mxu1 %v1269_v19  ;;  %v36_v19 = vld [vmem:[%s1761_s3 + $0x18] sm:$0xff] }
  0x90   :  { %v60_v4 = vpop.xlane.xlu0 %59 }
  0x91   :  { %v65_v5 = vmul.f32 0.03125, %v60_v4 }
  0x93   :  { %v67_v6 = vsub.f32 %v1442_v0, %v65_v5 }
  0x94   :  { %v63_v7 = vpop.xlane.xlu0 %62 }
  0x95   :  { %v66_v8 = vmul.f32 0.03125, %v63_v7  ;;  %v69_v9 = vmul.f32 %v67_v6, %v67_v6 }
  0x97   :  { %v68_v10 = vsub.f32 %v1447_v1, %v66_v8  ;;  %v71_v11 = vsel %vm57_vm0, %v69_v9, 0.0 }
  0x98   :  { %72 = vadd.xlane.f32.xlu1 %v71_v11 }
  0x99   :  { %v70_v12 = vmul.f32 %v68_v10, %v68_v10 }
  0x9b   :  { %v74_v13 = vsel %vm57_vm0, %v70_v12, 0.0 }
  0x9c   :  { %75 = vadd.xlane.f32.xlu1 %v74_v13 }
 0x125   :  { %v73_v20 = vpop.xlane.xlu1 %72 }
 0x126   :  { %v77_v21 = vmul.f32 0.03125, %v73_v20 }
 0x128   :  { %v79_v22 = vadd.f32 1e-05, %v77_v21 }
 0x129   :  { %v76_v23 = vpop.xlane.xlu1 %75 }
 0x12a   :  { %1373 = vrsqrt.f32 %v79_v22  ;;  %v78_v24 = vmul.f32 0.03125, %v76_v23 }
 0x12c   :  { %v80_v25 = vadd.f32 1e-05, %v78_v24 }
 0x12e   :  { %1375 = vrsqrt.f32 %v80_v25 }
 0x134   :  { %v1374_v26 = vpop.eup %1373 }
 0x135   :  { %v83_v28 = vmul.f32 %v1374_v26, %v67_v6 }
 0x137   :  { %v89_v30 = vmul.f32 %v1088_v27, %v83_v28 }
 0x138   :  { %v1376_v31 = vpop.eup %1375 }
 0x139   :  { %v84_v32 = vmul.f32 %v1376_v31, %v68_v10  ;;  %v95_v33 = vadd.f32 %v1089_v29, %v89_v30 }
 0x13b   :  { %v90_v34 = vmul.f32 %v1088_v27, %v84_v32  ;;  %1172 = vmatprep.mubr.msk.f32.mxu1 %vm57_vm0, %v95_v33 }
 0x13d   :  { %v96_v35 = vadd.f32 %v1089_v29, %v90_v34 }
 0x13f   :  { %1173 = vmatmul.mubr.msk.f32.vlgmr.msra.gmra.mrb[0].mxu1 %vm57_vm0, %v96_v35 }
 0x212   :  { %v1174_v37 = vpop.f32.mrb[0].mxu1 }
 0x213   :  { %v1480_v38 = vadd.f32 %v1174_v37, %v1090_v36  ;;  %v177_v39 = vpop.f32.mrb[1].mxu1 }
 0x214   :  { %v1482_v40 = vadd.f32 %v1090_v36, %v177_v39 }
 0x215   :  { %231 = vrot.lane.b32.xlu1 %v1480_v38, %s1397_s14  ;;  %v187_v8 = vmul.f32 %v1480_v38, %v1502_v46 }
 0x216   :  { %229 = vrot.lane.b32.xlu0 %v1482_v40, %s1397_s14  ;;  %v186_v6 = vmul.f32 %v1482_v40, %v1495_v42 }
 0x219   :  { %247 = vrot.lane.b32.xlu1 %v1482_v40, %s1398_s15 }
 0x21a   :  { %208 = vrot.lane.b32.xlu0 %v1482_v40, %s1399_s16 }
 0x21d   :  { %249 = vrot.lane.b32.xlu1 %v1480_v38, %s1398_s15 }
 0x221   :  { %210 = vrot.lane.b32.xlu1 %v1480_v38, %s1399_s16 }
 0x287   :  { %v232_v41 = vpop.permute.xlu1 %231 }
 0x288   :  { %v230_v43 = vpop.permute.xlu0 %229  ;;  %v236_v48 = vmul.f32 %v232_v41, %v1502_v46 }
 0x289   :  { %v235_v44 = vmul.f32 %v230_v43, %v1495_v42 }
 0x28b   :  { %v248_v45 = vpop.permute.xlu1 %247  ;;  %239 = vrot.lane.b32.xlu0 %v235_v44, %s1399_s16 }
 0x28c   :  { %v253_v47 = vmul.f32 %v248_v45, %v1495_v42  ;;  %v209_v51 = vpop.permute.xlu0 %208 }
 0x28d   :  { %v214_v54 = vmul.f32 %v209_v51, %v1495_v42 }
 0x28e   :  { %257 = vrot.lane.b32.xlu1 %v253_v47, %s1400_s21  ;;  %v38_v47 = vld [vmem:[%s1761_s3 + $0x28] sm:$0xff] }
 0x28f   :  { %v250_v49 = vpop.permute.xlu1 %249  ;;  %241 = vrot.lane.b32.xlu0 %v236_v48, %s1399_s16 }
 0x290   :  { %v254_v50 = vmul.f32 %v250_v49, %v1502_v46 }
 0x292   :  { %259 = vrot.lane.b32.xlu1 %v254_v50, %s1400_s21 }
 0x293   :  { %v211_v52 = vpop.permute.xlu1 %210 }
 0x294   :  { %v215_v59 = vmul.f32 %v211_v52, %v1502_v46 }
 0x2fd   :  { %v240_v53 = vpop.permute.xlu0 %239 }
 0x2fe   :  { %v245_v56 = vsub.f32 %v235_v44, %v240_v53  ;;  %v37_v44 = vld [vmem:[%s1761_s3 + $0x20] sm:$0xff] }
 0x300   :  { %v258_v55 = vpop.permute.xlu1 %257 }
 0x301   :  { %v263_v57 = vadd.f32 %v258_v55, %v214_v54  ;;  %v242_v58 = vpop.permute.xlu0 %241 }
 0x302   :  { %v246_v62 = vsub.f32 %v236_v48, %v242_v58 }
 0x303   :  { %v1513_v60 = vsel %vm226_vm1, %v245_v56, %v263_v57 }
 0x304   :  { %v260_v61 = vpop.permute.xlu1 %259  ;;  %267 = vxpose.xlu0.b32.start [1/2] (short) (narrow) %v1513_v60, 32 }
 0x305   :  { %v264_v63 = vadd.f32 %v260_v61, %v215_v59  ;;  %v34_v61 = vld [vmem:[%s1761_s3 + $0x8] sm:$0xff] }
 0x307   :  { %v1517_v2 = vsel %vm226_vm1, %v246_v62, %v264_v63  ;;  %v33_v62 = vld [vmem:[%s1761_s3] sm:$0xff] }
 0x308   :  { %268 = vxpose.xlu0.b32.end [2/2] (short) (narrow) %v1517_v2, 32 }
 0x384   :  { %v283_v3 = vpop.trf.xlu0 }
 0x385   :  { %303 = vrot.lane.b32.xlu1 %v283_v3, %s1400_s21 }
 0x388   :  { %v284_v4 = vpop.trf.xlu0 }
 0x389   :  { %315 = vrot.lane.b32.xlu1 %v283_v3, %s1401_s22 }
 0x38c   :  { %v285_v5 = vpop.trf.xlu0 }
 0x38d   :  { %327 = vrot.lane.b32.xlu1 %v283_v3, %s1402_s23  ;;  %319 = vrot.lane.b32.xlu0 %v285_v5, %s1401_s22 }
 0x390   :  { %v286_v7 = vpop.trf.xlu0 }
 0x391   :  { %305 = vrot.lane.b32.xlu1 %v284_v4, %s1400_s21 }
 0x395   :  { %317 = vrot.lane.b32.xlu1 %v284_v4, %s1401_s22 }
 0x399   :  { %329 = vrot.lane.b32.xlu1 %v284_v4, %s1402_s23 }
 0x39d   :  { %307 = vrot.lane.b32.xlu1 %v285_v5, %s1400_s21 }
 0x3a1   :  { %200 = vrot.lane.b32.xlu1 %v1482_v40, %s1400_s21 }
 0x3a5   :  { %202 = vrot.lane.b32.xlu1 %v1480_v38, %s1400_s21 }
 0x3a9   :  { %190 = vrot.lane.b32.xlu1 %v186_v6, %s1399_s16 }
 0x3ad   :  { %218 = vrot.lane.b32.xlu1 %v214_v54, %s1400_s21 }
 0x3b1   :  { %331 = vrot.lane.b32.xlu1 %v285_v5, %s1402_s23 }
 0x3b5   :  { %309 = vrot.lane.b32.xlu1 %v286_v7, %s1400_s21 }
 0x3b9   :  { %321 = vrot.lane.b32.xlu1 %v286_v7, %s1401_s22 }
 0x3bd   :  { %333 = vrot.lane.b32.xlu1 %v286_v7, %s1402_s23 }
 0x3c1   :  { %192 = vrot.lane.b32.xlu1 %v187_v8, %s1399_s16 }
 0x3c5   :  { %220 = vrot.lane.b32.xlu1 %v215_v59, %s1400_s21  ;;  %s1403_s21 = smov 64  }
 0x3f7   :  { %v304_v9 = vpop.permute.xlu1 %303 }
 0x3f8   :  { %v339_v14 = vsel %vm226_vm1, %v283_v3, %v304_v9 }
 0x3fb   :  { %v316_v10 = vpop.permute.xlu1 %315 }
 0x3fc   :  { %v343_v15 = vsel %vm57_vm0, %v339_v14, %v316_v10  ;;  %v49_v10 = vld [vmem:[%s1760_s4 + $0x10] sm:$0xff]  ;;  %v50_v14 = vld [vmem:[%s1760_s4 + $0x18] sm:$0xff] }
 0x3ff   :  { %v328_v11 = vpop.permute.xlu1 %327  ;;  %v320_v39 = vpop.permute.xlu0 %319 }
 0x400   :  { %v348_v17 = vsel %vm347_vm2, %v343_v15, %v328_v11  ;;  %v41_v11 = vld [vmem:[%s1761_s3 + $0x40] sm:$0xff] }
 0x401   :  { %v352_v23 = vmul.f32 %v348_v17, %v35_v16  ;;  %v51_v15 = vld [vmem:[%s1760_s4 + $0x20] sm:$0xff]  ;;  %v43_v16 = vld [vmem:[%s1761_s3 + $0x50] sm:$0xff]  ;;  %v44_v17 = vld [vmem:[%s1761_s3 + $0x58] sm:$0xff] }
 0x403   :  { %v306_v12 = vpop.permute.xlu1 %305 }
 0x404   :  { %v340_v18 = vsel %vm226_vm1, %v284_v4, %v306_v12  ;;  %v42_v12 = vld [vmem:[%s1761_s3 + $0x48] sm:$0xff] }
 0x407   :  { %v318_v13 = vpop.permute.xlu1 %317 }
 0x408   :  { %v344_v20 = vsel %vm57_vm0, %v340_v18, %v318_v13  ;;  %v1285_v13 = vpack.c.bf16 %v42_v12, %v41_v11  ;;  %v1289_v18 = vpack.c.bf16 %v44_v17, %v43_v16 }
 0x40b   :  { %v330_v21 = vpop.permute.xlu1 %329 }
 0x40c   :  { %v349_v22 = vsel %vm347_vm2, %v344_v20, %v330_v21  ;;  %v52_v20 = vld [vmem:[%s1760_s4 + $0x28] sm:$0xff]  ;;  %v45_v21 = vld [vmem:[%s1761_s3 + $0x60] sm:$0xff] }
 0x40d   :  { %v353_v24 = vmul.f32 %v349_v22, %v36_v19  ;;  %v54_v19 = vld [vmem:[%s1760_s4 + $0x38] sm:$0xff]  ;;  %v46_v22 = vld [vmem:[%s1761_s3 + $0x68] sm:$0xff] }
 0x40f   :  { %v308_v25 = vpop.permute.xlu1 %307  ;;  %v1273_v26 = vpack.c.bf16 %v353_v24, %v352_v23  ;;  %v1293_v23 = vpack.c.bf16 %v46_v22, %v45_v21  ;;  %v56_v24 = vld [vmem:[%s1760_s4 + $0x48] sm:$0xff] }
 0x410   :  { %v341_v37 = vsel %vm226_vm1, %v285_v5, %v308_v25  ;;  %v53_v25 = vld [vmem:[%s1760_s4 + $0x30] sm:$0xff] }
 0x411   :  { %1274 = vmatprep.subr.bf16.mxu1 %v1273_v26  ;;  %v345_v43 = vsel %vm57_vm0, %v341_v37, %v320_v39 }
 0x412   :  { %1276 = vmatpush3.bf16.msra.mxu1 %v1273_v26  ;;  %v55_v26 = vld [vmem:[%s1760_s4 + $0x40] sm:$0xff] }
 0x413   :  { %v201_v27 = vpop.permute.xlu1 %200 }
 0x414   :  { %v206_v30 = vmul.f32 %v201_v27, %v1495_v42 }
 0x417   :  { %v203_v28 = vpop.permute.xlu1 %202 }
 0x418   :  { %v207_v55 = vmul.f32 %v203_v28, %v1502_v46 }
 0x41b   :  { %v191_v29 = vpop.permute.xlu1 %190 }
 0x41c   :  { %v196_v32 = vsub.f32 %v186_v6, %v191_v29 }
 0x41f   :  { %v219_v31 = vpop.permute.xlu1 %218 }
 0x420   :  { %v224_v33 = vadd.f32 %v219_v31, %v206_v30 }
 0x422   :  { %v227_v34 = vsel %vm226_vm1, %v196_v32, %v224_v33 }
 0x423   :  { %1183 = vmatprep.mubr.msk.f32.mxu1 %vm57_vm0, %v227_v34  ;;  %v332_v35 = vpop.permute.xlu1 %331 }
 0x424   :  { %v350_v42 = vsel %vm347_vm2, %v345_v43, %v332_v35 }
 0x425   :  { %v354_v51 = vmul.f32 %v350_v42, %v37_v44 }
 0x427   :  { %v310_v36 = vpop.permute.xlu1 %309 }
 0x428   :  { %v342_v45 = vsel %vm226_vm1, %v286_v7, %v310_v36  ;;  %v39_v7 = vld [vmem:[%s1761_s3 + $0x30] sm:$0xff] }
 0x42b   :  { %v322_v41 = vpop.permute.xlu1 %321 }
 0x42c   :  { %v346_v48 = vsel %vm57_vm0, %v342_v45, %v322_v41 }
 0x42f   :  { %v334_v49 = vpop.permute.xlu1 %333 }
 0x430   :  { %v351_v50 = vsel %vm347_vm2, %v346_v48, %v334_v49 }
 0x431   :  { %v355_v52 = vmul.f32 %v351_v50, %v38_v47 }
 0x433   :  { %v193_v53 = vpop.permute.xlu1 %192  ;;  %v1277_v54 = vpack.c.bf16 %v355_v52, %v354_v51 }
 0x434   :  { %v197_v57 = vsub.f32 %v187_v8, %v193_v53  ;;  %v40_v8 = vld [vmem:[%s1761_s3 + $0x38] sm:$0xff] }
 0x435   :  { %1278 = vmatprep.subr.bf16.mxu1 %v1277_v54  ;;  %v1281_v9 = vpack.c.bf16 %v40_v8, %v39_v7 }
 0x436   :  { %1280 = vmatpush3.bf16.msra.mxu1 %v1277_v54 }
 0x437   :  { %v221_v56 = vpop.permute.xlu1 %220  ;;  %1282 = vmatprep.subr.bf16.mxu0 %v1281_v9 }
 0x438   :  { %v225_v58 = vadd.f32 %v221_v56, %v207_v55  ;;  %1284 = vmatpush3.bf16.msra.mxu0 %v1281_v9 }
 0x439   :  { %1286 = vmatprep.subr.bf16.mxu0 %v1285_v13 }
 0x43a   :  { %v228_v59 = vsel %vm226_vm1, %v197_v57, %v225_v58  ;;  %v688_v58 = vld [vmem:[%s1758_s1 + $0x8] sm:$0xff] }
 0x43b   :  { %1184 = vmatmul.mubr.msk.f32.vlgmr.msra.gmra.mrb[2].mxu1 %vm57_vm0, %v228_v59  ;;  %v689_v59 = vld [vmem:[%s1758_s1 + $0x20] sm:$0xff] }
 0x43c   :  { %1288 = vmatpush3.bf16.msra.mxu0 %v1285_v13 }
 0x43d   :  { %1290 = vmatprep.subr.bf16.mxu0 %v1289_v18 }
 0x440   :  { %1292 = vmatpush3.bf16.msra.mxu0 %v1289_v18 }
 0x441   :  { %1294 = vmatprep.subr.bf16.mxu0 %v1293_v23 }
 0x444   :  { %1296 = vmatpush3.bf16.msra.mxu0 %v1293_v23 }
 0x50e   :  { %v1185_v63 = vpop.f32.mrb[2].mxu1 }
 0x50f   :  { %v434_v3 = vadd.f32 %v1185_v63, %v34_v61  ;;  %v428_v46 = vpop.f32.mrb[3].mxu1  ;;  %v690_v61 = vld [vmem:[%s1758_s1 + $0x38] sm:$0xff]  ;;  %v691_v63 = vld [vmem:[%s1758_s1 + $0x50] sm:$0xff] }
 0x510   :  { %v429_v4 = vadd.f32 %v428_v46, %v33_v62  ;;  %v1313_v62 = vpack.c.bf16 %v689_v59, %v688_v58 }
 0x511   :  { %v441_v5 = vsel %vm437_vm3, %v434_v3, -inf }
 0x512   :  { %442 = vmax.xlane.f32.xlu0 %v441_v5  ;;  %v438_v6 = vsel %vm437_vm3, %v429_v4, -inf  ;;  %1314 = vmatprep.subr.bf16.mxu0 %v1313_v62 }
 0x513   :  { %439 = vmax.xlane.f32.xlu1 %v438_v6 }
 0x524   :  { %543 = vrot.lane.b32.xlu1 %v49_v10, %s1403_s21 }
 0x528   :  { %545 = vrot.lane.b32.xlu0 %v50_v14, %s1403_s21  ;;  %547 = vrot.lane.b32.xlu1 %v51_v15, %s1403_s21 }
 0x52c   :  { %553 = vrot.lane.b32.xlu0 %v54_v19, %s1403_s21  ;;  %549 = vrot.lane.b32.xlu1 %v52_v20, %s1403_s21 }
 0x530   :  { %557 = vrot.lane.b32.xlu0 %v56_v24, %s1403_s21  ;;  %551 = vrot.lane.b32.xlu1 %v53_v25, %s1403_s21 }
 0x534   :  { %555 = vrot.lane.b32.xlu1 %v55_v26, %s1403_s21 }
 0x59f   :  { %v443_v27 = vpop.xlane.xlu0 %442 }
 0x5a0   :  { %v445_v28 = vsub.f32 %v434_v3, %v443_v27  ;;  %v440_v29 = vpop.xlane.xlu1 %439  ;;  %v1317_v3 = vpack.c.bf16 %v691_v63, %v690_v61  ;;  %v1102_v63 = vld [vmem:[%s1759_s5 + $0x4] ss:$0 sm:$0xff] }
 0x5a1   :  { %v444_v30 = vsub.f32 %v429_v4, %v440_v29  ;;  %v1099_v29 = vld [vmem:[%s1759_s5 + $0x6] ss:$0 sm:$0xff] }
 0x5a2   :  { %v448_v31 = vmul.f32 1.442695, %v445_v28 }
 0x5a3   :  { %v446_v32 = vmul.f32 1.442695, %v444_v30  ;;  %v546_v33 = vpop.permute.xlu0 %545 }
 0x5a4   :  { %v568_v34 = vmul.f32 %v546_v33, %v1480_v38  ;;  %v544_v35 = vpop.permute.xlu1 %543 }
 0x5a5   :  { %1377 = vpow2.f32 %v446_v32  ;;  %v567_v36 = vmul.f32 %v544_v35, %v1482_v40 }
 0x5a6   :  { %1379 = vpow2.f32 %v448_v31 }
 0x5a7   :  { %v1353_v37 = vpack.i.bf16 %v568_v34, %v567_v36  ;;  %v554_v41 = vpop.permute.xlu0 %553 }
 0x5a8   :  { %v548_v39 = vpop.permute.xlu1 %547  ;;  %v572_v50 = vmul.f32 %v554_v41, %v1480_v38 }
 0x5a9   :  { %1354 = vrot.lane.b32.xlu1 %v1353_v37, %s1403_s21  ;;  %v569_v44 = vmul.f32 %v548_v39, %v1482_v40 }
 0x5ab   :  { %v558_v52 = vpop.permute.xlu0 %557 }
 0x5ac   :  { %v550_v43 = vpop.permute.xlu1 %549  ;;  %v574_v55 = vmul.f32 %v558_v52, %v1480_v38  ;;  %v819_v52 = vld [vmem:[%s1758_s1 + $0x40] sm:$0xff] }
 0x5ad   :  { %v570_v42 = vmul.f32 %v550_v43, %v1480_v38 }
 0x5af   :  { %v1378_v45 = vpop.eup %1377  ;;  %v1358_v47 = vpack.i.bf16 %v570_v42, %v569_v44 }
 0x5b0   :  { %v1380_v48 = vpop.eup %1379  ;;  %1202 = vmatprep.mubr.msk.f32.mxu0 %vm437_vm3, %v1378_v45  ;;  %v552_v49 = vpop.permute.xlu1 %551 }
 0x5b1   :  { %v571_v51 = vmul.f32 %v552_v49, %v1482_v40  ;;  %1203 = vmatmul.mubr.msk.f32.vlgmr.msra.gmra.mrb[0].mxu0 %vm437_vm3, %v1380_v48  ;;  %1359 = vrot.lane.b32.xlu0 %v1358_v47, %s1403_s21  ;;  %v817_v49 = vld [vmem:[%s1758_s1 + $0x10] sm:$0xff] }
 0x5b2   :  { %1316 = vmatpush3.bf16.msra.mxu0 %v1313_v62 }
 0x5b3   :  { %v1363_v53 = vpack.i.bf16 %v572_v50, %v571_v51  ;;  %1318 = vmatprep.subr.bf16.mxu0 %v1317_v3  ;;  %v818_v50 = vld [vmem:[%s1758_s1 + $0x28] sm:$0xff] }
 0x5b4   :  { %v556_v54 = vpop.permute.xlu1 %555  ;;  %v1321_v51 = vpack.c.bf16 %v818_v50, %v817_v49 }
 0x5b5   :  { %v573_v56 = vmul.f32 %v556_v54, %v1482_v40  ;;  %1364 = vrot.lane.b32.xlu1 %v1363_v53, %s1403_s21  ;;  %v820_v53 = vld [vmem:[%s1758_s1 + $0x58] sm:$0xff] }
 0x5b6   :  { %1320 = vmatpush3.bf16.msra.mxu0 %v1317_v3  ;;  %v1325_v54 = vpack.c.bf16 %v820_v53, %v819_v52 }
 0x5b7   :  { %v1368_v57 = vpack.i.bf16 %v574_v55, %v573_v56 }
 0x5b9   :  { %1369 = vrot.lane.b32.xlu0 %v1368_v57, %s1403_s21 }
 0x61b   :  { %v1355_v46 = vpop.permute.xlu1 %1354 }
 0x61c   :  { %v1357_v4 = vunpack.i.h.bf16 %v1355_v46  ;;  %v1356_v5 = vunpack.i.l.bf16 %v1355_v46 }
 0x61e   :  { %v1297_v6 = vpack.c.bf16 %v1357_v4, %v1356_v5  ;;  %v1103_v5 = vld [vmem:[%s1759_s5 + $0x5] ss:$0 sm:$0xff] }
 0x620   :  { %1298 = vmatprep.subr.bf16.mxu1 %v1297_v6 }
 0x621   :  { %1300 = vmatpush3.bf16.msra.mxu1 %v1297_v6 }
 0x623   :  { %v1360_v7 = vpop.permute.xlu0 %1359 }
 0x624   :  { %v1362_v8 = vunpack.i.h.bf16 %v1360_v7  ;;  %v1361_v9 = vunpack.i.l.bf16 %v1360_v7 }
 0x626   :  { %v1301_v10 = vpack.c.bf16 %v1362_v8, %v1361_v9 }
 0x627   :  { %v1365_v11 = vpop.permute.xlu1 %1364 }
 0x628   :  { %v1367_v12 = vunpack.i.h.bf16 %v1365_v11  ;;  %v1366_v13 = vunpack.i.l.bf16 %v1365_v11  ;;  %1302 = vmatprep.subr.bf16.mxu1 %v1301_v10  ;;  %v973_v11 = vld [vmem:[%s1762_s2 + $0x8] sm:$0xff] }
 0x629   :  { %1304 = vmatpush3.bf16.msra.mxu1 %v1301_v10  ;;  %v972_v10 = vld [vmem:[%s1762_s2] sm:$0xff] }
 0x62a   :  { %v1305_v14 = vpack.c.bf16 %v1367_v12, %v1366_v13  ;;  %v974_v12 = vld [vmem:[%s1762_s2 + $0x10] sm:$0xff]  ;;  %v1329_v13 = vpack.c.bf16 %v973_v11, %v972_v10 }
 0x62b   :  { %v1370_v15 = vpop.permute.xlu0 %1369 }
 0x62c   :  { %v1372_v16 = vunpack.i.h.bf16 %v1370_v15  ;;  %v1371_v17 = vunpack.i.l.bf16 %v1370_v15  ;;  %1306 = vmatprep.subr.bf16.mxu1 %v1305_v14  ;;  %1330 = vmatprep.subr.bf16.mxu0 %v1329_v13 }
 0x62d   :  { %1308 = vmatpush3.bf16.msra.mxu1 %v1305_v14  ;;  %v975_v14 = vld [vmem:[%s1762_s2 + $0x18] sm:$0xff] }
 0x62e   :  { %v1309_v18 = vpack.c.bf16 %v1372_v16, %v1371_v17  ;;  %v1333_v15 = vpack.c.bf16 %v975_v14, %v974_v12  ;;  %v976_v16 = vld [vmem:[%s1762_s2 + $0x20] sm:$0xff]  ;;  %v977_v17 = vld [vmem:[%s1762_s2 + $0x28] sm:$0xff] }
 0x630   :  { %1310 = vmatprep.subr.bf16.mxu1 %v1309_v18 }
 0x631   :  { %1312 = vmatpush3.bf16.msra.mxu1 %v1309_v18  ;;  %v1337_v18 = vpack.c.bf16 %v977_v17, %v976_v16 }
 0x632   :  { %1322 = vmatprep.subr.bf16.mxu1 %v1321_v51 }
 0x684   :  { %v1204_v19 = vpop.f32.mrb[0].mxu0 }
 0x685   :  { %v528_v20 = vadd.f32 1e-30, %v1204_v19  ;;  %v522_v21 = vpop.f32.mrb[1].mxu0  ;;  %v978_v19 = vld [vmem:[%s1762_s2 + $0x30] sm:$0xff] }
 0x686   :  { %v523_v22 = vadd.f32 1e-30, %v522_v21 }
 0x687   :  { %1381 = vrcp.f32 %v528_v20  ;;  %v979_v20 = vld [vmem:[%s1762_s2 + $0x38] sm:$0xff] }
 0x688   :  { %1383 = vrcp.f32 %v523_v22  ;;  %v1341_v21 = vpack.c.bf16 %v979_v20, %v978_v19  ;;  %v1104_v22 = vld [vmem:[%s1759_s5 + $0x1] ss:$0 sm:$0xff] }
 0x691   :  { %v1382_v23 = vpop.eup %1381 }
 0x692   :  { %v1384_v24 = vpop.eup %1383  ;;  %v534_v26 = vmul.f32 %v1382_v23, %v1380_v48 }
 0x693   :  { %v533_v25 = vmul.f32 %v1384_v24, %v1378_v45 }
 0x695   :  { %1221 = vmatprep.mubr.msk.f32.mxu1 %vm437_vm3, %v533_v25 }
 0x696   :  { %1222 = vmatmul.mubr.msk.f32.vlgmr.msra.gmra.mrb[4].mxu1 %vm437_vm3, %v534_v26 }
 0x697   :  { %1324 = vmatpush3.bf16.msra.mxu1 %v1321_v51 }
 0x698   :  { %1326 = vmatprep.subr.bf16.mxu1 %v1325_v54 }
 0x69b   :  { %1328 = vmatpush3.bf16.msra.mxu1 %v1325_v54 }
 0x769   :  { %v1223_v27 = vpop.f32.mrb[4].mxu1 }
 0x76a   :  { %v679_v28 = vpop.f32.mrb[5].mxu1 }
 0x76b   :  { %1232 = vmatprep.mubr.msk.f32.mxu0 %vm57_vm0, %v679_v28 }
 0x76c   :  { %1233 = vmatmul.mubr.msk.f32.vlgmr.msra.gmra.mrb[2].mxu0 %vm57_vm0, %v1223_v27 }
 0x76d   :  { %1332 = vmatpush3.bf16.msra.mxu0 %v1329_v13 }
 0x76e   :  { %1334 = vmatprep.subr.bf16.mxu0 %v1333_v15 }
 0x771   :  { %1336 = vmatpush3.bf16.msra.mxu0 %v1333_v15 }
 0x772   :  { %1338 = vmatprep.subr.bf16.mxu0 %v1337_v18 }
 0x775   :  { %1340 = vmatpush3.bf16.msra.mxu0 %v1337_v18 }
 0x776   :  { %1342 = vmatprep.subr.bf16.mxu0 %v1341_v21 }
 0x779   :  { %1344 = vmatpush3.bf16.msra.mxu0 %v1341_v21 }
 0x83f   :  { %v1234_v30 = vpop.f32.mrb[2].mxu0 }
 0x840   :  { %v774_v31 = vadd.f32 %v1234_v30, %v1099_v29  ;;  %v768_v32 = vpop.f32.mrb[3].mxu0 }
 0x841   :  { %v769_v33 = vadd.f32 %v1099_v29, %v768_v32 }
 0x842   :  { %v1668_v34 = vadd.f32 %v774_v31, %v1447_v1 }
 0x843   :  { %v1671_v35 = vadd.f32 %v769_v33, %v1442_v0 }
 0x844   :  { %v782_v36 = vsel %vm57_vm0, %v1668_v34, 0.0 }
 0x845   :  { %783 = vadd.xlane.f32.xlu0 %v782_v36  ;;  %v779_v37 = vsel %vm57_vm0, %v1671_v35, 0.0 }
 0x846   :  { %780 = vadd.xlane.f32.xlu1 %v779_v37 }
 0x8d2   :  { %v784_v39 = vpop.xlane.xlu0 %783 }
 0x8d3   :  { %v786_v41 = vmul.f32 0.03125, %v784_v39  ;;  %v781_v43 = vpop.xlane.xlu1 %780 }
 0x8d4   :  { %v785_v44 = vmul.f32 0.03125, %v781_v43 }
 0x8d5   :  { %v788_v42 = vsub.f32 %v1668_v34, %v786_v41 }
 0x8d6   :  { %v787_v1 = vsub.f32 %v1671_v35, %v785_v44 }
 0x8d7   :  { %v790_v45 = vmul.f32 %v788_v42, %v788_v42 }
 0x8d8   :  { %v789_v47 = vmul.f32 %v787_v1, %v787_v1 }
 0x8d9   :  { %v794_v0 = vsel %vm57_vm0, %v790_v45, 0.0 }
 0x8da   :  { %795 = vadd.xlane.f32.xlu1 %v794_v0  ;;  %v791_v48 = vsel %vm57_vm0, %v789_v47, 0.0 }
 0x8db   :  { %792 = vadd.xlane.f32.xlu0 %v791_v48 }
 0x967   :  { %v796_v55 = vpop.xlane.xlu1 %795 }
 0x968   :  { %v798_v56 = vmul.f32 0.03125, %v796_v55  ;;  %v793_v57 = vpop.xlane.xlu0 %792 }
 0x969   :  { %v797_v58 = vmul.f32 0.03125, %v793_v57 }
 0x96a   :  { %v800_v59 = vadd.f32 1e-05, %v798_v56 }
 0x96b   :  { %v799_v61 = vadd.f32 1e-05, %v797_v58 }
 0x96c   :  { %1385 = vrsqrt.f32 %v800_v59 }
 0x96d   :  { %1387 = vrsqrt.f32 %v799_v61 }
 0x976   :  { %v1386_v62 = vpop.eup %1385 }
 0x977   :  { %v1388_v3 = vpop.eup %1387  ;;  %v804_v46 = vmul.f32 %v1386_v62, %v788_v42 }
 0x978   :  { %v803_v4 = vmul.f32 %v1388_v3, %v787_v1 }
 0x979   :  { %v810_v6 = vmul.f32 %v1102_v63, %v804_v46 }
 0x97a   :  { %v809_v7 = vmul.f32 %v1102_v63, %v803_v4 }
 0x97b   :  { %v816_v9 = vadd.f32 %v1103_v5, %v810_v6 }
 0x97c   :  { %v815_v8 = vadd.f32 %v1103_v5, %v809_v7 }
 0x97e   :  { %1243 = vmatprep.mubr.msk.f32.mxu1 %vm57_vm0, %v815_v8 }
 0x97f   :  { %1244 = vmatmul.mubr.msk.f32.vlgmr.msra.gmra.mrb[6].mxu1 %vm57_vm0, %v816_v9 }
 0xa52   :  { %v1245_v23 = vpop.f32.mrb[6].mxu1 }
 0xa53   :  { %v903_v24 = vadd.f32 %v1245_v23, %v1104_v22  ;;  %v897_v25 = vpop.f32.mrb[7].mxu1  ;;  %v1107_v23 = vld [vmem:[%s1759_s5 + $0x7] ss:$0 sm:$0xff] }
 0xa54   :  { %v898_v26 = vadd.f32 %v1104_v22, %v897_v25 }
 0xa55   :  { %966 = vrot.lane.b32.xlu1 %v903_v24, %s1403_s21  ;;  %v909_v28 = vmul.f32 0.70710677, %v903_v24  ;;  %v907_v16 = vmul.f32 0.5, %v903_v24 }
 0xa56   :  { %964 = vrot.lane.b32.xlu0 %v898_v26, %s1403_s21  ;;  %v908_v27 = vmul.f32 0.70710677, %v898_v26  ;;  %v906_v15 = vmul.f32 0.5, %v898_v26 }
 0xa57   :  { %v913_v30 = vsub.f32 0.0, %v909_v28  ;;  %vm911_vm5 = vcmp.ge.f32.partialorder %v909_v28, 0.0 }
 0xa58   :  { %v912_v29 = vsub.f32 0.0, %v908_v27  ;;  %vm910_vm4 = vcmp.ge.f32.partialorder %v908_v27, 0.0 }
 0xa59   :  { %1069 = vrot.lane.b32.xlu1 %v1513_v60, %s1401_s22  ;;  %v915_v32 = vsel %vm911_vm5, %v909_v28, %v913_v30 }
 0xa5a   :  { %1071 = vrot.lane.b32.xlu0 %v1517_v2, %s1401_s22  ;;  %v914_v31 = vsel %vm910_vm4, %v908_v27, %v912_v29  ;;  %v917_v36 = vmul.f32 0.3275911, %v915_v32  ;;  %v943_v49 = vsub.f32 0.0, %v915_v32 }
 0xa5b   :  { %v916_v33 = vmul.f32 0.3275911, %v914_v31  ;;  %v942_v48 = vsub.f32 0.0, %v914_v31 }
 0xa5c   :  { %v919_v39 = vadd.f32 1.0, %v917_v36  ;;  %v945_v53 = vmul.f32 %v943_v49, %v915_v32 }
 0xa5d   :  { %v918_v37 = vadd.f32 1.0, %v916_v33  ;;  %v944_v52 = vmul.f32 %v942_v48, %v914_v31 }
 0xa5e   :  { %v948_v57 = vmul.f32 1.442695, %v945_v53 }
 0xa5f   :  { %1389 = vrcp.f32 %v918_v37  ;;  %v946_v56 = vmul.f32 1.442695, %v944_v52 }
 0xa60   :  { %1391 = vrcp.f32 %v919_v39 }
 0xa61   :  { %1393 = vpow2.f32 %v946_v56 }
 0xa62   :  { %1395 = vpow2.f32 %v948_v57 }
 0xa69   :  { %v1390_v60 = vpop.eup %1389 }
 0xa6a   :  { %v1392_v41 = vpop.eup %1391  ;;  %v924_v43 = vmul.f32 1.0614054, %v1390_v60 }
 0xa6b   :  { %v925_v2 = vmul.f32 1.0614054, %v1392_v41  ;;  %v1394_v46 = vpop.eup %1393 }
 0xa6c   :  { %v926_v44 = vadd.f32 -1.4531521, %v924_v43  ;;  %v1396_v4 = vpop.eup %1395 }
 0xa6d   :  { %v927_v42 = vadd.f32 -1.4531521, %v925_v2 }
 0xa6e   :  { %v928_v1 = vmul.f32 %v1390_v60, %v926_v44 }
 0xa6f   :  { %v929_v45 = vmul.f32 %v1392_v41, %v927_v42 }
 0xa70   :  { %v930_v47 = vadd.f32 1.4214138, %v928_v1 }
 0xa71   :  { %v931_v0 = vadd.f32 1.4214138, %v929_v45 }
 0xa72   :  { %v932_v50 = vmul.f32 %v1390_v60, %v930_v47 }
 0xa73   :  { %v933_v51 = vmul.f32 %v1392_v41, %v931_v0 }
 0xa74   :  { %v934_v54 = vadd.f32 -0.28449672, %v932_v50 }
 0xa75   :  { %v935_v55 = vadd.f32 -0.28449672, %v933_v51 }
 0xa76   :  { %v936_v58 = vmul.f32 %v1390_v60, %v934_v54 }
 0xa77   :  { %v937_v59 = vmul.f32 %v1392_v41, %v935_v55 }
 0xa78   :  { %v938_v61 = vadd.f32 0.2548296, %v936_v58 }
 0xa79   :  { %v939_v62 = vadd.f32 0.2548296, %v937_v59 }
 0xa7a   :  { %v940_v63 = vmul.f32 %v1390_v60, %v938_v61 }
 0xa7b   :  { %v941_v3 = vmul.f32 %v1392_v41, %v939_v62 }
 0xa7c   :  { %v950_v5 = vmul.f32 %v1394_v46, %v940_v63 }
 0xa7d   :  { %v951_v6 = vmul.f32 %v1396_v4, %v941_v3 }
 0xa7e   :  { %v952_v7 = vsub.f32 1.0, %v950_v5 }
 0xa7f   :  { %v953_v8 = vsub.f32 1.0, %v951_v6 }
 0xa80   :  { %v954_v9 = vsub.f32 0.0, %v952_v7 }
 0xa81   :  { %v955_v10 = vsub.f32 0.0, %v953_v8 }
 0xa82   :  { %v956_v11 = vsel %vm910_vm4, %v952_v7, %v954_v9 }
 0xa83   :  { %v957_v12 = vsel %vm911_vm5, %v953_v8, %v955_v10  ;;  %v958_v13 = vadd.f32 1.0, %v956_v11 }
 0xa84   :  { %v959_v14 = vadd.f32 1.0, %v957_v12 }
 0xa85   :  { %v960_v18 = vmul.f32 %v958_v13, %v906_v15 }
 0xa86   :  { %v961_v19 = vmul.f32 %v959_v14, %v907_v16 }
 0xac7   :  { %v967_v17 = vpop.permute.xlu1 %966 }
 0xac8   :  { %v965_v20 = vpop.permute.xlu0 %964  ;;  %v971_v22 = vmul.f32 %v967_v17, %v961_v19 }
 0xac9   :  { %v970_v21 = vmul.f32 %v965_v20, %v960_v18 }
 0xacb   :  { %1262 = vmatprep.mubr.msk.f32.mxu0 %vm437_vm3, %v970_v21  ;;  %v1070_v31 = vpop.permute.xlu1 %1069 }
 0xacc   :  { %1263 = vmatmul.mubr.msk.f32.vlgmr.msra.gmra.mrb[4].mxu0 %vm437_vm3, %v971_v22  ;;  %v1072_v26 = vpop.permute.xlu0 %1071 }
 0xb9f   :  { %v1264_v25 = vpop.f32.mrb[4].mxu0 }
 0xba0   :  { %v1062_v27 = vadd.f32 %v1264_v25, %v1107_v23  ;;  %v1056_v28 = vpop.f32.mrb[5].mxu0 }
 0xba1   :  { %v1057_v29 = vadd.f32 %v1107_v23, %v1056_v28 }
 0xba2   :  { %v1066_v24 = vadd.f32 %v1062_v27, %v1668_v34 }
 0xba3   :  { %v1065_v30 = vadd.f32 %v1057_v29, %v1671_v35 }
 0xba4   :  { %v1076_v32 = vsel %vm57_vm0, %v1066_v24, %v1072_v26 }
 0xba5   :  { %v1078_v33 = vsel %vm437_vm3, %v1076_v32, %v1480_v38  ;;  %v1075_v36 = vsel %vm57_vm0, %v1065_v30, %v1070_v31 }
 0xba6   :  { %v1081_v37 = vsel %vm1079_vm6, %v1078_v33, 0.0  ;;  %v1077_v39 = vsel %vm437_vm3, %v1075_v36, %v1482_v40 }
 0xba7   :  { %1083 = vst [vmem:[%s1763_s6 + $0x8] sm:$0xff] %v1081_v37  ;;  %v1080_v34 = vsel %vm1079_vm6, %v1077_v39, 0.0 }
 0xba8   :  { %1082 = vst [vmem:[%s1763_s6] sm:$0xff] %v1080_v34 }

</bundles_post_ra>
